<compile_context>
chip_gen: v7x
topology: tpu7x:2x2x1
jax: 0.10.0
libtpu: 0.0.40
codegen_flags: <defaults>
</compile_context>

<pallas_src>
import jax
import jax.numpy as jnp
from jax.experimental import pallas as pl
from jax.experimental.pallas import tpu as pltpu

ROW_ALIGN = 16  # bf16 packed sublane tiling


def _round_up(n, m):
    return ((n + m - 1) // m) * m


# ----------------------------------------------------------------------------
# Path A: whole TemporalBlock stack fused into one pallas_call
# ----------------------------------------------------------------------------
def _make_fused_stack_kernel(metas, L_pad):
    def kernel(*refs):
        x_ref, o_ref = refs[0], refs[-1]
        h = x_ref[0]                                          # (L_pad, cin_p0) bf16
        w = 1
        for m in metas:
            w1_ref, b1_ref, w2_ref, b2_ref = refs[w:w + 4]
            w += 4
            K, d = m["K"], m["dilation"]
            cin_p, cout_p, has_down = m["cin_p"], m["cout_p"], m["has_down"]
            H = (K - 1) * d

            # conv1 (+ folded 1x1 downsample): causal left context is zeros
            ext = (jnp.concatenate([jnp.zeros((H, cin_p), jnp.bfloat16), h], axis=0)
                   if H > 0 else h)
            cols1 = jnp.concatenate(
                [ext[H - (K - 1 - k) * d:H - (K - 1 - k) * d + L_pad, :]
                 for k in range(K)], axis=1)
            pre = jnp.dot(cols1, w1_ref[...],
                          preferred_element_type=jnp.float32) + b1_ref[...]
            if has_down:
                h1 = jnp.maximum(pre[:, :cout_p], 0.0)
                res = pre[:, cout_p:]
            else:
                h1 = jnp.maximum(pre, 0.0)
                res = h.astype(jnp.float32)
            h1 = h1.astype(jnp.bfloat16)                      # dropout = identity

            # conv2: its causal left context is exact zeros (PyTorch chomp)
            ext2 = (jnp.concatenate([jnp.zeros((H, cout_p), jnp.bfloat16), h1], axis=0)
                    if H > 0 else h1)
            cols2 = jnp.concatenate(
                [ext2[H - (K - 1 - k) * d:H - (K - 1 - k) * d + L_pad, :]
                 for k in range(K)], axis=1)
            out2 = jnp.maximum(
                jnp.dot(cols2, w2_ref[...],
                        preferred_element_type=jnp.float32) + b2_ref[...], 0.0)

            h = jnp.maximum(out2 + res, 0.0).astype(jnp.bfloat16)
        o_ref[0] = h

    return kernel


def _tcn_fused_stack(x_bf, layers):
    """x_bf: (B, L_pad, cin_p0) bf16 -> (B, L_pad, cout_last_p) bf16."""
    B, L_pad, cin_p0 = x_bf.shape
    cout_last_p = layers[-1]["cout_p"]
    const2 = lambda b: (0, 0)

    inputs = [x_bf]
    in_specs = [pl.BlockSpec((1, L_pad, cin_p0), lambda b: (b, 0, 0))]
    flops = 0
    w_bytes = 0
    for p in layers:
        inputs += [p["w1f"], p["b1f"], p["w2"], p["b2"]]
        in_specs += [pl.BlockSpec(p["w1f"].shape, const2),
                     pl.BlockSpec(p["b1f"].shape, const2),
                     pl.BlockSpec(p["w2"].shape, const2),
                     pl.BlockSpec(p["b2"].shape, const2)]
        K, cin_p, cout_p, n1 = p["K"], p["cin_p"], p["cout_p"], p["n1"]
        flops += 2 * L_pad * (K * cin_p) * n1 + 2 * L_pad * (K * cout_p) * cout_p
        w_bytes += (K * cin_p * n1 + K * cout_p * cout_p) * 2 + (n1 + cout_p) * 4

    return pl.pallas_call(
        _make_fused_stack_kernel(layers, L_pad),
        out_shape=jax.ShapeDtypeStruct((B, L_pad, cout_last_p), jnp.bfloat16),
        grid=(B,),
        in_specs=in_specs,
        out_specs=pl.BlockSpec((1, L_pad, cout_last_p), lambda b: (b, 0, 0)),
        compiler_params=pltpu.CompilerParams(
            dimension_semantics=("parallel",),
            vmem_limit_bytes=32 * 1024 * 1024),
        cost_estimate=pl.CostEstimate(
            flops=int(B * flops), transcendentals=0,
            bytes_accessed=int(B * L_pad * (cin_p0 + cout_last_p) * 2 + w_bytes)),
    )(*inputs)


# ----------------------------------------------------------------------------
# Path B: one fused pallas_call per TemporalBlock, length axis tiled
# ----------------------------------------------------------------------------
def _make_block_tiled_kernel(K, dilation, cin_p, cout_p, l_tile, Hp2,
                             tiles_per_batch, has_down):
    H = (K - 1) * dilation

    def kernel(*refs):
        if H > 0:
            x_ref, tail_ref, w1_ref, b1_ref, w2_ref, b2_ref, o_ref = refs
        else:
            x_ref, w1_ref, b1_ref, w2_ref, b2_ref, o_ref = refs
            tail_ref = None

        x_cur = x_ref[...]                                    # (l_tile, cin_p) bf16

        if H > 0:
            # Halo = last Hp2 rows of the previous tile (zeroed by the wrapper
            # at sequence starts) -- only ~2H extra rows fetched per step.
            ext = jnp.concatenate([tail_ref[0], x_cur], axis=0)
            # conv1 (+ folded downsample) for times [-H, l_tile): the extra H
            # rows are conv2's own causal halo (no second HBM fetch).
            cols1 = jnp.concatenate(
                [ext[Hp2 - H - (K - 1 - k) * dilation:
                     Hp2 - H - (K - 1 - k) * dilation + l_tile + H, :]
                 for k in range(K)], axis=1)
        else:
            cols1 = x_cur

        pre = jnp.dot(cols1, w1_ref[...],
                      preferred_element_type=jnp.float32) + b1_ref[...]
        if has_down:
            h1 = jnp.maximum(pre[:, :cout_p], 0.0)
            res = pre[H:, cout_p:] if H > 0 else pre[:, cout_p:]
        else:
            h1 = jnp.maximum(pre, 0.0)
            res = x_cur.astype(jnp.float32)

        if H > 0:
            # PyTorch's chomped conv2 sees exact zeros for t < 0 at a sequence
            # start (not relu(bias1)): zero the negative-time rows there.
            if tiles_per_batch == 1:
                gate = jnp.float32(0.0)
            else:
                is_start = (pl.program_id(0) % tiles_per_batch) == 0
                gate = 1.0 - is_start.astype(jnp.float32)
            row = jax.lax.broadcasted_iota(jnp.int32, (l_tile + H, 1), 0)
            h1 = h1 * jnp.where(row < H, gate, 1.0)

        h1 = h1.astype(jnp.bfloat16)                          # dropout = identity
        if H > 0:
            cols2 = jnp.concatenate(
                [h1[H - (K - 1 - k) * dilation:
                    H - (K - 1 - k) * dilation + l_tile, :]
                 for k in range(K)], axis=1)
        else:
            cols2 = h1
        out2 = jnp.maximum(
            jnp.dot(cols2, w2_ref[...],
                    preferred_element_type=jnp.float32) + b2_ref[...], 0.0)

        o_ref[...] = jnp.maximum(out2 + res, 0.0).astype(jnp.bfloat16)

    return kernel


def _temporal_block_tiled(h, p, l_tile, tiles_per_batch):
    """h: (B, L_pad, cin_p) bf16 -> (B, L_pad, cout_p) bf16 (one TemporalBlock)."""
    B, L_pad, cin_p = h.shape
    K, d = p["K"], p["dilation"]
    cout_p, n1, has_down = p["cout_p"], p["n1"], p["has_down"]
    H = (K - 1) * d
    n_tiles = B * tiles_per_batch

    x_flat = h.reshape(B * L_pad, cin_p)
    inputs = [x_flat]
    in_specs = [pl.BlockSpec((l_tile, cin_p), lambda i: (i, 0))]

    Hp2 = 0
    if H > 0:
        Hp2 = _round_up(2 * H, ROW_ALIGN)
        # tails[b, j] = last Hp2 rows of tile j-1 of batch b (zeros for j == 0)
        tile_tails = h.reshape(B, tiles_per_batch, l_tile, cin_p)[:, :, l_tile - Hp2:, :]
        tails = jnp.concatenate(
            [jnp.zeros((B, 1, Hp2, cin_p), h.dtype), tile_tails[:, :-1]], axis=1)
        inputs.append(tails.reshape(n_tiles, Hp2, cin_p))
        in_specs.append(pl.BlockSpec((1, Hp2, cin_p), lambda i: (i, 0, 0)))

    const2 = lambda i: (0, 0)
    inputs += [p["w1f"], p["b1f"], p["w2"], p["b2"]]
    in_specs += [pl.BlockSpec(p["w1f"].shape, const2),
                 pl.BlockSpec(p["b1f"].shape, const2),
                 pl.BlockSpec(p["w2"].shape, const2),
                 pl.BlockSpec(p["b2"].shape, const2)]

    flops = n_tiles * (2 * (l_tile + H) * (K * cin_p) * n1
                       + 2 * l_tile * (K * cout_p) * cout_p)
    bytes_acc = (n_tiles * (l_tile * cin_p + Hp2 * cin_p + l_tile * cout_p) * 2
                 + (K * cin_p * n1 + K * cout_p * cout_p) * 2 + (n1 + cout_p) * 4)

    out = pl.pallas_call(
        _make_block_tiled_kernel(K, d, cin_p, cout_p, l_tile, Hp2,
                                 tiles_per_batch, has_down),
        out_shape=jax.ShapeDtypeStruct((B * L_pad, cout_p), jnp.bfloat16),
        grid=(n_tiles,),
        in_specs=in_specs,
        out_specs=pl.BlockSpec((l_tile, cout_p), lambda i: (i, 0)),
        compiler_params=pltpu.CompilerParams(
            dimension_semantics=("parallel",),
            vmem_limit_bytes=32 * 1024 * 1024),
        cost_estimate=pl.CostEstimate(flops=int(flops), transcendentals=0,
                                      bytes_accessed=int(bytes_acc)),
    )(*inputs)
    return out.reshape(B, L_pad, cout_p)


# ----------------------------------------------------------------------------
# Top-level forward
# ----------------------------------------------------------------------------
def temporal_conv_net_pallas(x_ncl, layers, *, fuse_stack=None, l_tile_override=None):
    """x_ncl: (B, C, L) f32 as in PyTorch.  Returns (B, C_last, L) f32."""
    B, C, L = x_ncl.shape
    cin_p0 = layers[0]["cin_p"]
    c_last = layers[-1]["cout"]

    # NLC layout, lane-dense padded channels, bf16 inter-layer activations.
    h = jnp.transpose(x_ncl, (0, 2, 1))
    h = jnp.pad(h, ((0, 0), (0, 0), (0, cin_p0 - C))).astype(jnp.bfloat16)

    c_max = max(max(p["cin_p"], p["n1"]) for p in layers)
    H_max = max((p["K"] - 1) * p["dilation"] for p in layers)
    min_tile = _round_up(max(2 * H_max, ROW_ALIGN), ROW_ALIGN)

    L_seq = _round_up(L, ROW_ALIGN)
    # rough per-sequence VMEM bytes of the fused-stack kernel (activation,
    # im2col columns and f32 pre-activations)
    est_fused = L_seq * c_max * 24
    use_fused = (est_fused <= (12 << 20)) if fuse_stack is None else fuse_stack

    if use_fused:
        L_pad = L_seq
        h = jnp.pad(h, ((0, 0), (0, L_pad - L), (0, 0)))
        h = _tcn_fused_stack(h, layers)
    else:
        if l_tile_override is not None:
            l_tile = l_tile_override
            assert l_tile % ROW_ALIGN == 0 and l_tile >= min_tile
        else:
            l_tile = 2048
            while l_tile > ROW_ALIGN and l_tile * c_max * 2 > (1 << 20):
                l_tile //= 2
            l_tile = min(l_tile, _round_up(L, ROW_ALIGN))
            l_tile = max(_round_up(l_tile, ROW_ALIGN), min_tile)
            # keep >= 2 grid steps when possible (both v7x TensorCores busy)
            while (B * pl.cdiv(L, l_tile) < 2 and l_tile >= 2 * min_tile
                   and (l_tile // 2) % ROW_ALIGN == 0):
                l_tile //= 2
        L_pad = _round_up(L, l_tile)
        tiles_per_batch = L_pad // l_tile
        h = jnp.pad(h, ((0, 0), (0, L_pad - L), (0, 0)))
        # one L_pad/l_tile policy for the whole stack: the padded bf16
        # activation is carried through every layer, sliced only at the end.
        for p in layers:
            h = _temporal_block_tiled(h, p, l_tile, tiles_per_batch)

    out = h[:, :L, :c_last].astype(jnp.float32)
    return jnp.transpose(out, (0, 2, 1))


# ----------------------------------------------------------------------------
# Parameter construction (deterministic, synthetic) + weight_norm folding
# ----------------------------------------------------------------------------
def _weight_norm_conv_params(key, c_in, c_out, K):
    kv, kg, kb = jax.random.split(key, 3)
    v = 0.01 * jax.random.normal(kv, (c_out, c_in, K), jnp.float32)
    g = 1.0 + 0.1 * jax.random.normal(kg, (c_out,), jnp.float32)
    # weight_norm: w = g * v / ||v||  (norm over all dims except dim 0)
    norm = jnp.sqrt(jnp.sum(v * v, axis=(1, 2), keepdims=True))
    w = g[:, None, None] * v / norm                 # torch layout (Cout, Cin, K)
    b = 0.01 * jax.random.normal(kb, (c_out,), jnp.float32)
    return w, b


def _pack_conv_im2col(w_t, b, cin_p, cout_p):
    """torch (Cout,Cin,K) -> im2col (K*cin_p, cout_p) f32 + (1, cout_p) f32."""
    c_out, c_in, K = w_t.shape
    w = jnp.transpose(w_t, (2, 1, 0))                          # (K, Cin, Cout)
    w = jnp.pad(w, ((0, 0), (0, cin_p - c_in), (0, cout_p - c_out)))
    w = w.reshape(K * cin_p, cout_p)
    b_p = jnp.pad(b, (0, cout_p - c_out)).reshape(1, cout_p).astype(jnp.float32)
    return w, b_p


def build_tcn_params(key, num_inputs, num_channels, kernel_size, dilation_size=2):
    num_levels = len(num_channels)
    if isinstance(dilation_size, (list, tuple)):
        dilations = list(dilation_size)
    else:
        dilations = [dilation_size ** i for i in range(num_levels)]
    layers = []
    for i in range(num_levels):
        c_in = num_inputs if i == 0 else num_channels[i - 1]
        c_out = num_channels[i]
        cin_p, cout_p = _round_up(c_in, 128), _round_up(c_out, 128)
        K = kernel_size
        key, k1, k2, kd1, kd2 = jax.random.split(key, 5)
        w1_t, b1 = _weight_norm_conv_params(k1, c_in, c_out, K)
        w2_t, b2 = _weight_norm_conv_params(k2, c_out, c_out, K)
        w1, b1_p = _pack_conv_im2col(w1_t, b1, cin_p, cout_p)
        w2, b2_p = _pack_conv_im2col(w2_t, b2, cout_p, cout_p)
        has_down = c_in != c_out
        p = {
            "K": K, "dilation": dilations[i],
            "cin": c_in, "cout": c_out, "cin_p": cin_p, "cout_p": cout_p,
            "has_down": has_down,
            "w2": w2.astype(jnp.bfloat16), "b2": b2_p,
            # torch-layout copies kept for the pure-JAX reference
            "_w1_t": w1_t, "_b1": b1, "_w2_t": w2_t, "_b2": b2,
        }
        if has_down:
            wd_t = 0.01 * jax.random.normal(kd1, (c_out, c_in, 1), jnp.float32)
            bd = 0.01 * jax.random.normal(kd2, (c_out,), jnp.float32)
            # Fold the 1x1 downsample into conv1's im2col weight: it multiplies
            # x[t], i.e. the tap with offset 0 (tap index K-1).
            wd_ext = jnp.zeros((K * cin_p, cout_p), jnp.float32)
            wd_ext = wd_ext.at[(K - 1) * cin_p:(K - 1) * cin_p + c_in,
                               :c_out].set(wd_t[:, :, 0].T)
            bd_p = jnp.pad(bd, (0, cout_p - c_out)).reshape(1, cout_p)
            p["w1f"] = jnp.concatenate([w1, wd_ext], axis=1).astype(jnp.bfloat16)
            p["b1f"] = jnp.concatenate([b1_p, bd_p], axis=1)
            p["n1"] = 2 * cout_p
            p["_wd_t"] = wd_t
            p["_bd"] = bd
        else:
            p["w1f"] = w1.astype(jnp.bfloat16)
            p["b1f"] = b1_p
            p["n1"] = cout_p
        layers.append(p)
    return layers


# ----------------------------------------------------------------------------
# Pure-JAX reference (same bf16-input / f32-accumulate numerics)
# ----------------------------------------------------------------------------
def _causal_conv_ref(x_bf, w_t, b, dilation):
    K = w_t.shape[2]
    L = x_bf.shape[1]
    y = None
    for k in range(K):
        s = (K - 1 - k) * dilation
        xs = jnp.pad(x_bf, ((0, 0), (s, 0), (0, 0)))[:, :L, :]
        t = jnp.einsum("blc,oc->blo", xs, w_t[:, :, k].astype(jnp.bfloat16),
                       preferred_element_type=jnp.float32)
        y = t if y is None else y + t
    return y + b[None, None, :]


def tcn_ref(x_ncl, layers):
    h = jnp.transpose(x_ncl, (0, 2, 1)).astype(jnp.bfloat16)
    for p in layers:
        d = p["dilation"]
        o = jnp.maximum(_causal_conv_ref(h, p["_w1_t"], p["_b1"], d), 0.0)
        o = o.astype(jnp.bfloat16)
        o = jnp.maximum(_causal_conv_ref(o, p["_w2_t"], p["_b2"], d), 0.0)
        if p["has_down"]:
            res = jnp.einsum("blc,oc->blo", h,
                             p["_wd_t"][:, :, 0].astype(jnp.bfloat16),
                             preferred_element_type=jnp.float32)
            res = res + p["_bd"][None, None, :]
        else:
            res = h.astype(jnp.float32)
        h = jnp.maximum(o + res, 0.0).astype(jnp.bfloat16)
    return jnp.transpose(h.astype(jnp.float32), (0, 2, 1))


# ----------------------------------------------------------------------------
if __name__ == "__main__":
    key = jax.random.PRNGKey(0)
    k_x1, k_x2, k_p = jax.random.split(key, 3)

    # TemporalConvNet(num_inputs=4, num_channels=[8, 8], kernel_size=2)
    B, C_in, L = 2, 4, 16
    num_channels = [8, 8]
    kernel_size = 2
    layers = build_tcn_params(k_p, C_in, num_channels, kernel_size,
                              dilation_size=2)

    # Path A: whole stack fused in one pallas_call (activation resident in VMEM)
    x1 = jax.random.normal(k_x1, (B, C_in, L), jnp.float32)     # NCL like PyTorch
    out1 = jax.block_until_ready(temporal_conv_net_pallas(x1, layers))
    ref1 = tcn_ref(x1, layers)
    assert out1.shape == (B, num_channels[-1], L), out1.shape
    err1 = float(jnp.max(jnp.abs(out1 - ref1)))
    assert jnp.allclose(out1, ref1, rtol=2e-2, atol=2e-2), err1

    # Path B: per-block tiled kernels; small tile to exercise the cross-tile
    # causal "tails" halo and the sequence-start gating.
    B2, L2 = 2, 96
    x2 = jax.random.normal(k_x2, (B2, C_in, L2), jnp.float32)
    out2 = jax.block_until_ready(
        temporal_conv_net_pallas(x2, layers, fuse_stack=False, l_tile_override=32))
    ref2 = tcn_ref(x2, layers)
    assert out2.shape == (B2, num_channels[-1], L2), out2.shape
    err2 = float(jnp.max(jnp.abs(out2 - ref2)))
    assert jnp.allclose(out2, ref2, rtol=2e-2, atol=2e-2), err2

    print("KERNEL_OK")
</pallas_src>

<mosaic_0001>
module attributes {stable_mosaic.version = 11 : i64} {
  func.func @kernel(%arg0: i32, %arg1: memref<1x16x128xbf16, #tpu.memory_space<vmem>>, %arg2: memref<256x256xbf16, #tpu.memory_space<vmem>>, %arg3: memref<1x256xf32, #tpu.memory_space<vmem>>, %arg4: memref<256x128xbf16, #tpu.memory_space<vmem>>, %arg5: memref<1x128xf32, #tpu.memory_space<vmem>>, %arg6: memref<256x128xbf16, #tpu.memory_space<vmem>>, %arg7: memref<1x128xf32, #tpu.memory_space<vmem>>, %arg8: memref<256x128xbf16, #tpu.memory_space<vmem>>, %arg9: memref<1x128xf32, #tpu.memory_space<vmem>>, %arg10: memref<1x16x128xbf16, #tpu.memory_space<vmem>>) attributes {dimension_semantics = [#tpu.dimension_semantics<parallel>], iteration_bounds = array<i64: 2>, scalar_prefetch = 0 : i64, scratch_operands = 0 : i64, tpu.core_type = #tpu.core_type<tc>, window_params = [{transform_indices = @transform_0, window_bounds = array<i64: 1, 16, 128>}, {pipeline_mode = #tpu.pipeline_mode<synchronous>, transform_indices = @transform_1, window_bounds = array<i64: 256, 256>}, {pipeline_mode = #tpu.pipeline_mode<synchronous>, transform_indices = @transform_2, window_bounds = array<i64: 1, 256>}, {pipeline_mode = #tpu.pipeline_mode<synchronous>, transform_indices = @transform_3, window_bounds = array<i64: 256, 128>}, {pipeline_mode = #tpu.pipeline_mode<synchronous>, transform_indices = @transform_4, window_bounds = array<i64: 1, 128>}, {pipeline_mode = #tpu.pipeline_mode<synchronous>, transform_indices = @transform_5, window_bounds = array<i64: 256, 128>}, {pipeline_mode = #tpu.pipeline_mode<synchronous>, transform_indices = @transform_6, window_bounds = array<i64: 1, 128>}, {pipeline_mode = #tpu.pipeline_mode<synchronous>, transform_indices = @transform_7, window_bounds = array<i64: 256, 128>}, {pipeline_mode = #tpu.pipeline_mode<synchronous>, transform_indices = @transform_8, window_bounds = array<i64: 1, 128>}, {transform_indices = @transform_9, window_bounds = array<i64: 1, 16, 128>}]} {
    %c0 = arith.constant 0 : index
    %c0_0 = arith.constant 0 : index
    %c0_1 = arith.constant 0 : index
    %0 = vector.load %arg1[%c0, %c0_0, %c0_1] : memref<1x16x128xbf16, #tpu.memory_space<vmem>>, vector<1x16x128xbf16>
    %1 = vector.shape_cast %0 : vector<1x16x128xbf16> to vector<16x128xbf16>
    %cst = arith.constant 0.000000e+00 : bf16
    %2 = vector.broadcast %cst : bf16 to vector<1x128xbf16>
    %3 = tpu.concatenate %2, %1 in 0 : vector<1x128xbf16>, vector<16x128xbf16> -> vector<17x128xbf16>
    %4 = vector.extract_strided_slice %3 {offsets = [0, 0], sizes = [16, 128], strides = [1, 1]} : vector<17x128xbf16> to vector<16x128xbf16>
    %5 = vector.extract_strided_slice %3 {offsets = [1, 0], sizes = [16, 128], strides = [1, 1]} : vector<17x128xbf16> to vector<16x128xbf16>
    %6 = tpu.concatenate %4, %5 in 1 : vector<16x128xbf16>, vector<16x128xbf16> -> vector<16x256xbf16>
    %c0_2 = arith.constant 0 : index
    %c0_3 = arith.constant 0 : index
    %7 = vector.load %arg2[%c0_2, %c0_3] : memref<256x256xbf16, #tpu.memory_space<vmem>>, vector<256x256xbf16>
    %cst_4 = arith.constant dense<0.000000e+00> : vector<16x256xf32>
    %8 = tpu.matmul %6, %7, %cst_4 {dimension_numbers = #tpu.dot_dimension_numbers<[1], [0], [0], [1], [0, 0, 1, 1], [], []>} : vector<16x256xbf16>, vector<256x256xbf16>, vector<16x256xf32> -> vector<16x256xf32>
    %c0_5 = arith.constant 0 : index
    %c0_6 = arith.constant 0 : index
    %9 = vector.load %arg3[%c0_5, %c0_6] : memref<1x256xf32, #tpu.memory_space<vmem>>, vector<1x256xf32>
    %10 = vector.broadcast %9 : vector<1x256xf32> to vector<16x256xf32>
    %11 = arith.addf %8, %10 : vector<16x256xf32>
    %12 = vector.extract_strided_slice %11 {offsets = [0, 0], sizes = [16, 128], strides = [1, 1]} : vector<16x256xf32> to vector<16x128xf32>
    %cst_7 = arith.constant 0.000000e+00 : f32
    %13 = vector.broadcast %cst_7 : f32 to vector<16x128xf32>
    %14 = arith.maximumf %12, %13 : vector<16x128xf32>
    %15 = vector.extract_strided_slice %11 {offsets = [0, 128], sizes = [16, 128], strides = [1, 1]} : vector<16x256xf32> to vector<16x128xf32>
    %16 = arith.truncf %14 : vector<16x128xf32> to vector<16x128xbf16>
    %cst_8 = arith.constant 0.000000e+00 : bf16
    %17 = vector.broadcast %cst_8 : bf16 to vector<1x128xbf16>
    %18 = tpu.concatenate %17, %16 in 0 : vector<1x128xbf16>, vector<16x128xbf16> -> vector<17x128xbf16>
    %19 = vector.extract_strided_slice %18 {offsets = [0, 0], sizes = [16, 128], strides = [1, 1]} : vector<17x128xbf16> to vector<16x128xbf16>
    %20 = vector.extract_strided_slice %18 {offsets = [1, 0], sizes = [16, 128], strides = [1, 1]} : vector<17x128xbf16> to vector<16x128xbf16>
    %21 = tpu.concatenate %19, %20 in 1 : vector<16x128xbf16>, vector<16x128xbf16> -> vector<16x256xbf16>
    %c0_9 = arith.constant 0 : index
    %c0_10 = arith.constant 0 : index
    %22 = vector.load %arg4[%c0_9, %c0_10] : memref<256x128xbf16, #tpu.memory_space<vmem>>, vector<256x128xbf16>
    %cst_11 = arith.constant dense<0.000000e+00> : vector<16x128xf32>
    %23 = tpu.matmul %21, %22, %cst_11 {dimension_numbers = #tpu.dot_dimension_numbers<[1], [0], [0], [1], [0, 0, 1, 1], [], []>} : vector<16x256xbf16>, vector<256x128xbf16>, vector<16x128xf32> -> vector<16x128xf32>
    %c0_12 = arith.constant 0 : index
    %c0_13 = arith.constant 0 : index
    %24 = vector.load %arg5[%c0_12, %c0_13] : memref<1x128xf32, #tpu.memory_space<vmem>>, vector<1x128xf32>
    %25 = vector.broadcast %24 : vector<1x128xf32> to vector<16x128xf32>
    %26 = arith.addf %23, %25 : vector<16x128xf32>
    %cst_14 = arith.constant 0.000000e+00 : f32
    %27 = vector.broadcast %cst_14 : f32 to vector<16x128xf32>
    %28 = arith.maximumf %26, %27 : vector<16x128xf32>
    %29 = arith.addf %28, %15 : vector<16x128xf32>
    %cst_15 = arith.constant 0.000000e+00 : f32
    %30 = vector.broadcast %cst_15 : f32 to vector<16x128xf32>
    %31 = arith.maximumf %29, %30 : vector<16x128xf32>
    %32 = arith.truncf %31 : vector<16x128xf32> to vector<16x128xbf16>
    %cst_16 = arith.constant 0.000000e+00 : bf16
    %33 = vector.broadcast %cst_16 : bf16 to vector<2x128xbf16>
    %34 = tpu.concatenate %33, %32 in 0 : vector<2x128xbf16>, vector<16x128xbf16> -> vector<18x128xbf16>
    %35 = vector.extract_strided_slice %34 {offsets = [0, 0], sizes = [16, 128], strides = [1, 1]} : vector<18x128xbf16> to vector<16x128xbf16>
    %36 = vector.extract_strided_slice %34 {offsets = [2, 0], sizes = [16, 128], strides = [1, 1]} : vector<18x128xbf16> to vector<16x128xbf16>
    %37 = tpu.concatenate %35, %36 in 1 : vector<16x128xbf16>, vector<16x128xbf16> -> vector<16x256xbf16>
    %c0_17 = arith.constant 0 : index
    %c0_18 = arith.constant 0 : index
    %38 = vector.load %arg6[%c0_17, %c0_18] : memref<256x128xbf16, #tpu.memory_space<vmem>>, vector<256x128xbf16>
    %cst_19 = arith.constant dense<0.000000e+00> : vector<16x128xf32>
    %39 = tpu.matmul %37, %38, %cst_19 {dimension_numbers = #tpu.dot_dimension_numbers<[1], [0], [0], [1], [0, 0, 1, 1], [], []>} : vector<16x256xbf16>, vector<256x128xbf16>, vector<16x128xf32> -> vector<16x128xf32>
    %c0_20 = arith.constant 0 : index
    %c0_21 = arith.constant 0 : index
    %40 = vector.load %arg7[%c0_20, %c0_21] : memref<1x128xf32, #tpu.memory_space<vmem>>, vector<1x128xf32>
    %41 = vector.broadcast %40 : vector<1x128xf32> to vector<16x128xf32>
    %42 = arith.addf %39, %41 : vector<16x128xf32>
    %cst_22 = arith.constant 0.000000e+00 : f32
    %43 = vector.broadcast %cst_22 : f32 to vector<16x128xf32>
    %44 = arith.maximumf %42, %43 : vector<16x128xf32>
    %45 = arith.extf %32 : vector<16x128xbf16> to vector<16x128xf32>
    %46 = arith.truncf %44 : vector<16x128xf32> to vector<16x128xbf16>
    %cst_23 = arith.constant 0.000000e+00 : bf16
    %47 = vector.broadcast %cst_23 : bf16 to vector<2x128xbf16>
    %48 = tpu.concatenate %47, %46 in 0 : vector<2x128xbf16>, vector<16x128xbf16> -> vector<18x128xbf16>
    %49 = vector.extract_strided_slice %48 {offsets = [0, 0], sizes = [16, 128], strides = [1, 1]} : vector<18x128xbf16> to vector<16x128xbf16>
    %50 = vector.extract_strided_slice %48 {offsets = [2, 0], sizes = [16, 128], strides = [1, 1]} : vector<18x128xbf16> to vector<16x128xbf16>
    %51 = tpu.concatenate %49, %50 in 1 : vector<16x128xbf16>, vector<16x128xbf16> -> vector<16x256xbf16>
    %c0_24 = arith.constant 0 : index
    %c0_25 = arith.constant 0 : index
    %52 = vector.load %arg8[%c0_24, %c0_25] : memref<256x128xbf16, #tpu.memory_space<vmem>>, vector<256x128xbf16>
    %cst_26 = arith.constant dense<0.000000e+00> : vector<16x128xf32>
    %53 = tpu.matmul %51, %52, %cst_26 {dimension_numbers = #tpu.dot_dimension_numbers<[1], [0], [0], [1], [0, 0, 1, 1], [], []>} : vector<16x256xbf16>, vector<256x128xbf16>, vector<16x128xf32> -> vector<16x128xf32>
    %c0_27 = arith.constant 0 : index
    %c0_28 = arith.constant 0 : index
    %54 = vector.load %arg9[%c0_27, %c0_28] : memref<1x128xf32, #tpu.memory_space<vmem>>, vector<1x128xf32>
    %55 = vector.broadcast %54 : vector<1x128xf32> to vector<16x128xf32>
    %56 = arith.addf %53, %55 : vector<16x128xf32>
    %cst_29 = arith.constant 0.000000e+00 : f32
    %57 = vector.broadcast %cst_29 : f32 to vector<16x128xf32>
    %58 = arith.maximumf %56, %57 : vector<16x128xf32>
    %59 = arith.addf %58, %45 : vector<16x128xf32>
    %cst_30 = arith.constant 0.000000e+00 : f32
    %60 = vector.broadcast %cst_30 : f32 to vector<16x128xf32>
    %61 = arith.maximumf %59, %60 : vector<16x128xf32>
    %62 = arith.truncf %61 : vector<16x128xf32> to vector<16x128xbf16>
    %c0_31 = arith.constant 0 : index
    %c0_32 = arith.constant 0 : index
    %c0_33 = arith.constant 0 : index
    %63 = vector.load %arg10[%c0_31, %c0_32, %c0_33] : memref<1x16x128xbf16, #tpu.memory_space<vmem>>, vector<1x16x128xbf16>
    %64 = vector.shape_cast %63 : vector<1x16x128xbf16> to vector<16x128xbf16>
    %65 = vector.shape_cast %62 : vector<16x128xbf16> to vector<1x16x128xbf16>
    tpu.vector_store %arg10[%c0_31, %c0_32, %c0_33], %65 {strides = array<i32>} : memref<1x16x128xbf16, #tpu.memory_space<vmem>>, vector<1x16x128xbf16>,
    return
  }
  func.func @transform_0(%arg0: i32) -> (i32, i32, i32) {
    %c0_i32 = arith.constant 0 : i32
    %c0_i32_0 = arith.constant 0 : i32
    %c0_i32_1 = arith.constant 0 : i32
    return %arg0, %c0_i32, %c0_i32_0 : i32, i32, i32
  }
  func.func @transform_1(%arg0: i32) -> (i32, i32) {
    %c0_i32 = arith.constant 0 : i32
    %c0_i32_0 = arith.constant 0 : i32
    %c0_i32_1 = arith.constant 0 : i32
    return %c0_i32, %c0_i32_0 : i32, i32
  }
  func.func @transform_2(%arg0: i32) -> (i32, i32) {
    %c0_i32 = arith.constant 0 : i32
    %c0_i32_0 = arith.constant 0 : i32
    %c0_i32_1 = arith.constant 0 : i32
    return %c0_i32, %c0_i32_0 : i32, i32
  }
  func.func @transform_3(%arg0: i32) -> (i32, i32) {
    %c0_i32 = arith.constant 0 : i32
    %c0_i32_0 = arith.constant 0 : i32
    %c0_i32_1 = arith.constant 0 : i32
    return %c0_i32, %c0_i32_0 : i32, i32
  }
  func.func @transform_4(%arg0: i32) -> (i32, i32) {
    %c0_i32 = arith.constant 0 : i32
    %c0_i32_0 = arith.constant 0 : i32
    %c0_i32_1 = arith.constant 0 : i32
    return %c0_i32, %c0_i32_0 : i32, i32
  }
  func.func @transform_5(%arg0: i32) -> (i32, i32) {
    %c0_i32 = arith.constant 0 : i32
    %c0_i32_0 = arith.constant 0 : i32
    %c0_i32_1 = arith.constant 0 : i32
    return %c0_i32, %c0_i32_0 : i32, i32
  }
  func.func @transform_6(%arg0: i32) -> (i32, i32) {
    %c0_i32 = arith.constant 0 : i32
    %c0_i32_0 = arith.constant 0 : i32
    %c0_i32_1 = arith.constant 0 : i32
    return %c0_i32, %c0_i32_0 : i32, i32
  }
  func.func @transform_7(%arg0: i32) -> (i32, i32) {
    %c0_i32 = arith.constant 0 : i32
    %c0_i32_0 = arith.constant 0 : i32
    %c0_i32_1 = arith.constant 0 : i32
    return %c0_i32, %c0_i32_0 : i32, i32
  }
  func.func @transform_8(%arg0: i32) -> (i32, i32) {
    %c0_i32 = arith.constant 0 : i32
    %c0_i32_0 = arith.constant 0 : i32
    %c0_i32_1 = arith.constant 0 : i32
    return %c0_i32, %c0_i32_0 : i32, i32
  }
  func.func @transform_9(%arg0: i32) -> (i32, i32, i32) {
    %c0_i32 = arith.constant 0 : i32
    %c0_i32_0 = arith.constant 0 : i32
    %c0_i32_1 = arith.constant 0 : i32
    return %arg0, %c0_i32, %c0_i32_0 : i32, i32, i32
  }
}

</mosaic_0001>

<bundles_post_ra>
// kernel: tpu_custom_call.1
= control target key start
LH: loop header
LB: loop body
LE: loop exit
PB: predicated region body
PF: predicated region fallthrough
CT: control target
= control target key end

     0   :  { %s2405_s0 = inlined_call_operand.hbm [shape: bf16[2,16,128], index: 0, kind: input, shape index: {}]   ;;  %s2406_s1 = inlined_call_operand.hbm [shape: bf16[256,256], index: 1, kind: input, shape index: {}]   ;;  %s2407_s2 = inlined_call_operand.vmem [shape: f32[1,256], index: 2, kind: input, shape index: {}]   ;;  %s2408_s3 = inlined_call_operand.hbm [shape: bf16[256,128], index: 3, kind: input, shape index: {}]   ;;  %s2409_s4 = inlined_call_operand.vmem [shape: f32[1,128], index: 4, kind: input, shape index: {}]   ;;  %s2410_s5 = inlined_call_operand.hbm [shape: bf16[256,128], index: 5, kind: input, shape index: {}]   ;;  %s2411_s6 = inlined_call_operand.vmem [shape: f32[1,128], index: 6, kind: input, shape index: {}]   ;;  %s2412_s7 = inlined_call_operand.hbm [shape: bf16[256,128], index: 7, kind: input, shape index: {}]   ;;  %s2413_s8 = inlined_call_operand.vmem [shape: f32[1,128], index: 8, kind: input, shape index: {}]   ;;  %s2414_s9 = inlined_call_operand.hbm [shape: bf16[2,16,128], index: 9, kind: output, shape index: {}]  }
   0x1   :  { %2421 = sst [smem:[#allocation18_spill]] %s2413_s8 }
   0x2   :  { %2422 = sst [smem:[#allocation19_spill]] %s2414_s9 }
   0x3   :  { %14 = vsyncpa [#allocation3], 0 }
   0x4   :  { %16 = vsyncpa [#allocation3 + $0x1], 0 }
   0x5   :  { %17 = vsyncpa [#allocation6], 0 }
   0x6   :  { %18 = vsyncpa [#allocation9], 0 }
   0x7   :  { %19 = vsyncpa [#allocation4], 0 }
   0x8   :  { %21 = vsyncpa [#allocation4 + $0x1], 0  ;;  %s2076_s30 = smov 0   ;;  %s2078_s10 = smov 0  }
   0x9   :  { %s2080_s11 = smov 0   ;;  %s2082_s12 = smov 0  }
   0xa LB: > { %2423 = sst [smem:[#allocation16_spill]] %s2000_s30  ;;  %s2097_s13 = sadd.s32 4294967295, %s2012_s12   ;;  %s2012_s12 = sphi %s2082_s12, %s2452_s12   ;;  %s2008_s11 = sphi %s2080_s11, %s2451_s11   ;;  %s2004_s10 = sphi %s2078_s10, %s2450_s10   ;;  %s2000_s30 = sphi %s2076_s30, %s2449_s30  }
   0xb   : > { %s1419_s14 = sadd.s32 4294967294, %s2012_s12   ;;  %p47_p0 = scmp.ne.s32.totalorder %s2004_s10, %s2000_s30 }
   0xc   : > { %p2415_p1 = scmp.eq.s32.totalorder %s2097_s13, 0  ;;  %p245_p3 = scmp.eq.s32.totalorder %s1419_s14, 1 }
   0xd   : > { %p1420_p5 = scmp.ge.s32.totalorder %s2012_s12, 1  ;;  %p252_p7 = scmp.lt.s32.totalorder %s2012_s12, 3 }
   0xe   : > { %p2106_p4 = por %p2415_p1, %p47_p0  ;;  %p2111_p6 = por %p245_p3, %p47_p0 }
   0xf   : > { %p2116_p8 = pnand %p1420_p5, %p252_p7  ;;  %s2014_s18 = smov [#allocation5]  }
  0x10   : > { %s2424_s15 = scalar_select %p2106_p4, 1, 0 }
  0x11   : > { %s2425_s16 = scalar_select %p2111_p6, 1, 0 }
  0x12   : > { %s2427_s17 = scalar_select %p2116_p8, 1, 0 }
  0x13   : > { %2426 = sst [smem:[#allocation17_spill]] %s2425_s16  ;;  %s264_s19 = sshll.u32 %s2014_s18, 4  ;;  %s265_s19 = int_to_ptr.vmem [resolvable:$true] %s264_s19 }
  0x14   : > { %p1626_p9 = pneg %p2116_p8  ;;  %s2015_s21 = smov [#allocation8]  }
  0x15   : > { %s296_s22 = sshll.u32 %s2015_s21, 4  ;;  %s1796_s25 = scalar_lea.hbm %s2406_s1, 4096  ;;  %s297_s22 = int_to_ptr.vmem [resolvable:$true] %s296_s22 }
  0x16   : > { %p2125_p11 = pnand %p1626_p9, %p2415_p1  ;;  %p1797_p12 = scmp.ne.s32.totalorder %s2406_s1, %s1796_s25 }
  0x17   : > { %p1803_p5 = scmp.lt.u32.totalorder %s1796_s25, %s2406_s1 }
  0x18   : > { %p2137_p13 = pneg %p2125_p11 }
  0x1a   : > { %p1799_p0 = pnand %p2137_p13, %p1797_p12 }
  0x1c   : > { %p1800_p3 = pneg %p1799_p0 }
  0x1e   : > { %p1805_p7 = pnand %p1803_p5, %p1800_p3 }
  0x20   : > { %1808 = shalt.err (!%p1805_p7)
}
  0x21   : > { %s1809_s18 = scalar_lea.vmem %s265_s19, 4096  ;;  %p1817_p2 = scmp.lt.s32.totalorder %s265_s19, %s265_s19 }
  0x22   : > { %p1810_p9 = scmp.ne.s32.totalorder %s265_s19, %s1809_s18  ;;  %p1818_p6 = scmp.lt.s32.totalorder %s1809_s18, %s1809_s18 }
  0x24   : > { %p1812_p10 = pnand %p1810_p9, %p2137_p13  ;;  %p1819_p4 = por %p1818_p6, %p1817_p2 }
  0x26   : > { %p1813_p1 = pneg %p1812_p10 }
  0x28   : > { %p1820_p8 = pnand %p1819_p4, %p1813_p1 }
  0x2a   : > { %1823 = shalt.err (!%p1820_p8)
}
  0x2b   : > { %s2016_s21 = smov 128   ;;  %s2017_s23 = smov 8  }
  0x2c   : > { %1629 = dma.hbm_to_vmem [thread:$0]  (!%p2125_p11), %s2406_s1, 4096, %s265_s19, [#allocation6], %s2016_s21, %s2016_s21, %s2017_s23  }
  0x2d   : > { %s2018_s26 = smov [#allocation7]   ;;  %s1824_s16 = scalar_lea.hbm %s2410_s5, 2048 }
  0x2e   : > { %s280_s27 = sshll.u32 %s2018_s26, 4  ;;  %p1825_p1 = scmp.ne.s32.totalorder %s2410_s5, %s1824_s16  ;;  %s281_s27 = int_to_ptr.vmem [resolvable:$true] %s280_s27 }
  0x2f   : > { %p1831_p6 = scmp.lt.u32.totalorder %s1824_s16, %s2410_s5 }
  0x30   : > { %p1827_p2 = pnand %p1825_p1, %p2137_p13 }
  0x32   : > { %p1828_p4 = pneg %p1827_p2 }
  0x34   : > { %p1833_p8 = pnand %p1831_p6, %p1828_p4 }
  0x36   : > { %1836 = shalt.err (!%p1833_p8)
}
  0x37   : > { %s1837_s19 = scalar_lea.vmem %s297_s22, 2048  ;;  %p1845_p3 = scmp.lt.s32.totalorder %s297_s22, %s297_s22 }
  0x38   : > { %p1838_p10 = scmp.ne.s32.totalorder %s297_s22, %s1837_s19  ;;  %p1846_p5 = scmp.lt.s32.totalorder %s1837_s19, %s1837_s19 }
  0x3a   : > { %p1840_p12 = pnand %p1838_p10, %p2137_p13  ;;  %p1847_p7 = por %p1846_p5, %p1845_p3 }
  0x3c   : > { %p1841_p0 = pneg %p1840_p12 }
  0x3e   : > { %p1848_p9 = pnand %p1847_p7, %p1841_p0 }
  0x40   : > { %1851 = shalt.err (!%p1848_p9)
}
  0x41   : > { %s2019_s30 = smov 64   ;;  %s2020_s21 = smov 4  }
  0x42   : > { %1635 = dma.hbm_to_vmem [thread:$0]  (!%p2125_p11), %s2410_s5, 2048, %s297_s22, [#allocation9], %s2019_s30, %s2019_s30, %s2020_s21  }
  0x43   : > { %s1852_s24 = scalar_lea.hbm %s2408_s3, 2048 }
  0x44   : > { %p1853_p1 = scmp.ne.s32.totalorder %s2408_s3, %s1852_s24  ;;  %p1859_p6 = scmp.lt.u32.totalorder %s1852_s24, %s2408_s3 }
  0x46   : > { %p1855_p2 = pnand %p1853_p1, %p2137_p13 }
  0x48   : > { %p1856_p4 = pneg %p1855_p2 }
  0x4a   : > { %p1861_p8 = pnand %p1859_p6, %p1856_p4 }
  0x4c   : > { %1864 = shalt.err (!%p1861_p8)
}
  0x4d   : > { %s1865_s18 = scalar_lea.vmem %s281_s27, 2048  ;;  %p1873_p3 = scmp.lt.s32.totalorder %s281_s27, %s281_s27 }
  0x4e   : > { %p1866_p10 = scmp.ne.s32.totalorder %s281_s27, %s1865_s18  ;;  %p1874_p5 = scmp.lt.s32.totalorder %s1865_s18, %s1865_s18 }
  0x50   : > { %p1868_p12 = pnand %p1866_p10, %p2137_p13  ;;  %p1875_p7 = por %p1874_p5, %p1873_p3 }
  0x52   : > { %p1869_p0 = pneg %p1868_p12 }
  0x54   : > { %p1876_p9 = pnand %p1875_p7, %p1869_p0 }
  0x56   : > { %1879 = shalt.err (!%p1876_p9)
}
  0x57   : > { %1632 = dma.hbm_to_vmem [thread:$0]  (!%p2125_p11), %s2408_s3, 2048, %s281_s27, [#allocation6], %s2019_s30, %s2019_s30, %s2020_s21  }
  0x58   : > { %s2021_s8 = smov [#allocation10]   ;;  %s1880_s24 = scalar_lea.hbm %s2412_s7, 2048 }
  0x59   : > { %s312_s9 = sshll.u32 %s2021_s8, 4  ;;  %p1881_p1 = scmp.ne.s32.totalorder %s2412_s7, %s1880_s24  ;;  %s313_s9 = int_to_ptr.vmem [resolvable:$true] %s312_s9 }
  0x5a   : > { %p1887_p6 = scmp.lt.u32.totalorder %s1880_s24, %s2412_s7 }
  0x5b   : > { %p1883_p2 = pnand %p1881_p1, %p2137_p13 }
  0x5d   : > { %p1884_p4 = pneg %p1883_p2 }
  0x5f   : > { %p1889_p8 = pnand %p1887_p6, %p1884_p4 }
  0x61   : > { %1892 = shalt.err (!%p1889_p8)
}
  0x62   : > { %s1893_s27 = scalar_lea.vmem %s313_s9, 2048  ;;  %p1901_p3 = scmp.lt.s32.totalorder %s313_s9, %s313_s9 }
  0x63   : > { %p1894_p10 = scmp.ne.s32.totalorder %s313_s9, %s1893_s27  ;;  %p1902_p5 = scmp.lt.s32.totalorder %s1893_s27, %s1893_s27 }
  0x65   : > { %p1896_p12 = pnand %p1894_p10, %p2137_p13  ;;  %p1903_p7 = por %p1902_p5, %p1901_p3 }
  0x67   : > { %p1897_p0 = pneg %p1896_p12 }
  0x69   : > { %p1904_p9 = pnand %p1903_p7, %p1897_p0 }
  0x6b   : > { %1907 = shalt.err (!%p1904_p9)
}
  0x6c   : > { %1638 = dma.hbm_to_vmem [thread:$0]  (!%p2125_p11), %s2412_s7, 2048, %s313_s9, [#allocation9], %s2019_s30, %s2019_s30, %s2020_s21  }
  0x6d   : > { %s2217_s28 = sadd.s32 1, %s2012_s12   ;;  %s34_s20 = sadd.s32 1, %s2008_s11 }
  0x6e   : > { %s31_s19 = ssub.s32 %s2012_s12, %s2217_s28  ;;  %p41_p13 = scmp.ne.s32.totalorder %s2008_s11, %s2004_s10 }
  0x6f   : > { %p32_p1 = scmp.eq.s32.totalorder %s31_s19, 0  ;;  %p42_p2 = scmp.eq.s32.totalorder %s2012_s12, 0 }
  0x70   : > { %p2430_p4 = scmp.eq.s32.totalorder %s2097_s13, 1  ;;  %p1651_p8 = scmp.lt.s32.totalorder %s2012_s12, 2 }
  0x71   : > { %s2233_s16 = scalar_select %p32_p1, %s2008_s11, %s34_s20  }
  0x72   : > { %p2227_p6 = por %p2430_p4, %p41_p13  ;;  %p43_p10 = por %p42_p2, %p41_p13 }
  0x73   : > { %s329_s23 = sand.u32 1, %s2008_s11   ;;  %s1531_s9 = sshll.u32 %s2012_s12, 7 }
  0x74   : > { %s1426_s24 = sshll.u32 %s329_s23, 3  ;;  %s2240_s29 = scalar_lea.hbm %s2405_s0, %s1531_s9 }
  0x75   : > { %s333_s14 = scalar_lea.vmem [#allocation2], %s1426_s24  ;;  %p2244_p11 = pnand %p1651_p8, %p43_p10 }
  0x76   : > { %s340_s27 = sshll.u32 %s333_s14, 4  ;;  %s2248_s22 = scalar_lea.sflag [#allocation3], %s329_s23  ;;  %s2242_s27 = int_to_ptr.vmem [resolvable:$true] %s340_s27 }
  0x77   : > { %s1908_s20 = scalar_lea.hbm %s2240_s29, 128  ;;  %p1910_p0 = pneg %p2244_p11 }
  0x78   : > { %p1909_p12 = scmp.ne.s32.totalorder %s2240_s29, %s1908_s20  ;;  %s1913_s9 = scalar_lea.hbm %s2405_s0, 256 }
  0x79   : > { %p1914_p7 = scmp.lt.u32.totalorder %s2240_s29, %s2405_s0  ;;  %p1915_p9 = scmp.lt.u32.totalorder %s1913_s9, %s1908_s20 }
  0x7a   : > { %p1911_p3 = pnand %p1910_p0, %p1909_p12  ;;  %p1917_p1 = scmp.lt.u32.totalorder %s1908_s20, %s2240_s29 }
  0x7b   : > { %p1916_p13 = por %p1915_p9, %p1914_p7 }
  0x7c   : > { %p1912_p5 = pneg %p1911_p3 }
  0x7d   : > { %p1918_p2 = por %p1917_p1, %p1916_p13 }
  0x7f   : > { %p1919_p4 = pnand %p1918_p2, %p1912_p5 }
  0x81   : > { %1922 = shalt.err (!%p1919_p4)
}
  0x82   : > { %s1923_s23 = scalar_lea.vmem %s2242_s27, 128  ;;  %s2022_s14 = smov [#allocation2]  }
  0x83   : > { %p1924_p8 = scmp.ne.s32.totalorder %s2242_s27, %s1923_s23  ;;  %s1928_s19 = sshll.u32 %s2022_s14, 4  ;;  %s1929_s19 = int_to_ptr.vmem [resolvable:$false] %s1928_s19 }
  0x84   : > { %s1930_s24 = scalar_lea.vmem %s1929_s19, 256  ;;  %p1931_p3 = scmp.lt.s32.totalorder %s2242_s27, %s1929_s19 }
  0x85   : > { %p1926_p10 = pnand %p1924_p8, %p1910_p0  ;;  %p1932_p7 = scmp.lt.s32.totalorder %s1930_s24, %s1923_s23 }
  0x87   : > { %p1927_p12 = pneg %p1926_p10  ;;  %p1933_p9 = por %p1932_p7, %p1931_p3 }
  0x89   : > { %p1934_p13 = pnand %p1933_p9, %p1927_p12 }
  0x8b   : > { %1937 = shalt.err (!%p1934_p13)
}
  0x8c   : > { %1642 = dma.hbm_to_vmem [thread:$0]  (!%p2244_p11), %s2240_s29, 128, %s2242_s27, %s2248_s22, %s2019_s30, %s2019_s30, %s2020_s21  }
  0x8d   : > { %p2433_p0 = scmp.ne.s32.totalorder %s2427_s17, 0 }
  0x8e   : > { %s2282_s20 = sand.u32 (!%p2433_p0), 1, %s2004_s10   ;;  %p2434_p5 = scmp.ne.s32.totalorder (!%p2433_p0), %s2424_s15, 0 }
  0x8f   : > { %352 = sbr.rel (%p2433_p0) target bundleno = 1164 (0x48c), region = 56  ;;  %s1430_s9 = sshll.u32 (!%p2433_p0), %s2282_s20, 3 }
  0x90   : > { %s355_s25 = scalar_lea.sflag (!%p2433_p0), [#allocation3], %s2282_s20  ;;  %s2288_s18 = scalar_lea.vmem (!%p2433_p0), [#allocation2], %s1430_s9 }
  0x96   : > { %1983 = dma.done.wait (%p2434_p5), %s355_s25, 128  }
  0x97   : > { %1985 = vsyncadd (%p2434_p5), %s355_s25, 4294967168  ;;  %p2435_p11 = scmp.eq.s32.totalorder %s2097_s13, 0 }
  0x99   : > { %1987 = dma.done.wait (%p2435_p11), [#allocation6], 6144   ;;  %p2436_p1 = pmov %p2435_p11 }
  0x9b   : > { %1989 = vsyncadd (%p2436_p1), [#allocation6], 4294961152  ;;  %p2437_p2 = pmov %p2436_p1 }
  0x9c   : > { %p2438_p4 = pmov %p2436_p1 }
  0x9d   : > { %1991 = dma.done.wait (%p2437_p2), [#allocation9], 4096  }
  0x9e   : > { %1993 = vsyncadd (%p2438_p4), [#allocation9], 4294963200  ;;  %v1699_v0 = vld [vmem:[#allocation5 + $0x4] ss:$8 sps:$4 sm:$0xff]   ;;  %v1701_v1 = vld [vmem:[#allocation5] ss:$8 sps:$4 sm:$0xff]   ;;  %v477_v63 = vlaneseq }
  0x9f   : > { %647 = vmatprep.subr.bf16.mxu0 %v1699_v0  ;;  %v1702_v2 = vld [vmem:[#allocation5 + $0x14] ss:$8 sps:$4 sm:$0xff]   ;;  %v1704_v3 = vld [vmem:[#allocation5 + $0x10] ss:$8 sps:$4 sm:$0xff]   ;;  %v1705_v4 = vld [vmem:[#allocation5 + $0x24] ss:$8 sps:$4 sm:$0xff]  }
  0xa0   : > { %648 = vmatpush1.bf16.msra.mxu0 %v1701_v1  ;;  %v1707_v5 = vld [vmem:[#allocation5 + $0x20] ss:$8 sps:$4 sm:$0xff]   ;;  %v1708_v6 = vld [vmem:[#allocation5 + $0x34] ss:$8 sps:$4 sm:$0xff]   ;;  %v1710_v7 = vld [vmem:[#allocation5 + $0x30] ss:$8 sps:$4 sm:$0xff]  }
  0xa1   : > { %649 = vmatprep.subr.bf16.mxu0 %v1702_v2  ;;  %v1711_v8 = vld [vmem:[#allocation5 + $0x44] ss:$8 sps:$4 sm:$0xff]   ;;  %v1713_v9 = vld [vmem:[#allocation5 + $0x40] ss:$8 sps:$4 sm:$0xff]   ;;  %vm425_vm0 = vcmask 1040384   ;;  %v1747_v16 = vld [vmem:[%s2288_s18] sm:$0xff]  }
  0xa2   : > { %v1714_v10 = vld [vmem:[#allocation5 + $0x54] ss:$8 sps:$4 sm:$0xff]   ;;  %vm426_vm1 = vsmask.f32 256  ;;  %v1716_v11 = vld [vmem:[#allocation5 + $0x50] ss:$8 sps:$4 sm:$0xff]   ;;  %vm2336_vm5 = vmneg %vm425_vm0 }
  0xa3   : > { %vm2303_vm2 = vmand %vm425_vm0, %vm426_vm1  ;;  %v1717_v13 = vld [vmem:[#allocation5 + $0x64] ss:$8 sps:$4 sm:$0xff]   ;;  %v1719_v14 = vld [vmem:[#allocation5 + $0x60] ss:$8 sps:$4 sm:$0xff]   ;;  %v418_v18 = vshrl.u32 %v1747_v16, 16  ;;  %v421_v19 = vshll.u32 %v1747_v16, 16 }
  0xa4   : > { %650 = vmatpush1.bf16.msra.mxu0 %v1704_v3  ;;  %v1720_v15 = vld [vmem:[#allocation5 + $0x74] ss:$8 sps:$4 sm:$0xff]   ;;  %v1748_v17 = vld [vmem:[#allocation7 + $0x40] sm:$0xff]   ;;  %v1750_v21 = vld [vmem:[#allocation7 + $0x48] sm:$0xff]   ;;  %vm429_vm3 = vsmask.f32 7424 }
  0xa5   : > { %651 = vmatprep.subr.bf16.mxu0 %v1705_v4  ;;  %v1749_v20 = vld [vmem:[#allocation7] sm:$0xff]   ;;  %v1722_v22 = vld [vmem:[#allocation5 + $0x70] ss:$8 sps:$4 sm:$0xff]   ;;  %1540 = vmatprep.subr.bf16.mxu1 %v1748_v17  ;;  %v420_v24 = vrot.slane %v418_v18, 7  ;;  %v1751_v25 = vld [vmem:[#allocation7 + $0x8] sm:$0xff]   ;;  %v2311_v0 = vshrl.u32 %v477_v63, 7 }
  0xa6   : > { %v1723_v23 = vld [vmem:[#allocation5 + $0x84] ss:$8 sps:$4 sm:$0xff]   ;;  %1541 = vmatpush3.bf16.msra.mxu1 %v1749_v20  ;;  %v1725_v28 = vld [vmem:[#allocation5 + $0x80] ss:$8 sps:$4 sm:$0xff]   ;;  %v1726_v29 = vld [vmem:[#allocation5 + $0x94] ss:$8 sps:$4 sm:$0xff]  }
  0xa7   : > { %1542 = vmatprep.subr.bf16.mxu1 %v1750_v21  ;;  %v423_v26 = vor.u32 %v421_v19, %v420_v24  ;;  %v438_v27 = vshll.u32 %v420_v24, 16  ;;  %v1728_v33 = vld [vmem:[#allocation5 + $0x90] ss:$8 sps:$4 sm:$0xff]   ;;  %v1729_v36 = vld [vmem:[#allocation5 + $0xa4] ss:$8 sps:$4 sm:$0xff]   ;;  %v479_v1 = vsub.s32 0, %v2311_v0 }
  0xa8   : > { %652 = vmatpush1.bf16.msra.mxu0 %v1707_v5  ;;  %v1731_v38 = vld [vmem:[#allocation5 + $0xa0] ss:$8 sps:$4 sm:$0xff]   ;;  %v1732_v40 = vld [vmem:[#allocation5 + $0xb4] ss:$8 sps:$4 sm:$0xff]   ;;  %v1734_v41 = vld [vmem:[#allocation5 + $0xb0] ss:$8 sps:$4 sm:$0xff]  }
  0xa9   : > { %653 = vmatprep.subr.bf16.mxu0 %v1708_v6  ;;  %v428_v30 = vsel %vm2303_vm2, 0, %v423_v26  ;;  %v440_v35 = vrot.slane %v438_v27, 1  ;;  %v1735_v42 = vld [vmem:[#allocation5 + $0xc4] ss:$8 sps:$4 sm:$0xff]   ;;  %v1737_v43 = vld [vmem:[#allocation5 + $0xc0] ss:$8 sps:$4 sm:$0xff]  }
  0xaa   : > { %1543 = vmatpush3.bf16.msra.mxu1 %v1751_v25  ;;  %v431_v31 = vshrl.u32 %v428_v30, 16  ;;  %v433_v32 = vshll.u32 %v428_v30, 16  ;;  %v1738_v44 = vld [vmem:[#allocation5 + $0xd4] ss:$8 sps:$4 sm:$0xff]   ;;  %v1740_v45 = vld [vmem:[#allocation5 + $0xd0] ss:$8 sps:$4 sm:$0xff]  }
  0xab   : > { %v1741_v46 = vld [vmem:[#allocation5 + $0xe4] ss:$8 sps:$4 sm:$0xff]   ;;  %v1743_v47 = vld [vmem:[#allocation5 + $0xe0] ss:$8 sps:$4 sm:$0xff]   ;;  %v1744_v48 = vld [vmem:[#allocation5 + $0xf4] ss:$8 sps:$4 sm:$0xff]  }
  0xac   : > { %654 = vmatpush1.bf16.msra.mxu0 %v1710_v7  ;;  %v435_v34 = vrot.slane %v433_v32, 1  ;;  %v1746_v49 = vld [vmem:[#allocation5 + $0xf0] ss:$8 sps:$4 sm:$0xff]   ;;  %v1756_v54 = vld [vmem:[#allocation7 + $0x60] sm:$0xff]   ;;  %v1758_v56 = vld [vmem:[#allocation7 + $0x68] sm:$0xff]   ;;  %vm906_vm4 = vcmask 1046528  }
  0xad   : > { %655 = vmatprep.subr.bf16.mxu0 %v1711_v8  ;;  %v1752_v50 = vld [vmem:[#allocation7 + $0x50] sm:$0xff]   ;;  %v1754_v52 = vld [vmem:[#allocation7 + $0x58] sm:$0xff]   ;;  %v1757_v55 = vld [vmem:[#allocation7 + $0x20] sm:$0xff]   ;;  %s2443_s23 = sld [smem:[#allocation18_spill]]  ;;  %s1534_s14 = sshll.u32 %s2097_s13, 7 }
  0xae   : > { %v436_v37 = vor.u32 %v435_v34, %v431_v31  ;;  %v1753_v51 = vld [vmem:[#allocation7 + $0x10] sm:$0xff]   ;;  %1544 = vmatprep.subr.bf16.mxu1 %v1752_v50  ;;  %v1755_v53 = vld [vmem:[#allocation7 + $0x18] sm:$0xff]   ;;  %v1759_v57 = vld [vmem:[#allocation7 + $0x28] sm:$0xff]   ;;  %s408_s19 = scalar_lea.vmem [#allocation11], %s1430_s9  ;;  %s2444_s15 = sld [smem:[#allocation19_spill]] }
  0xaf   : > { %1545 = vmatpush3.bf16.msra.mxu1 %v1753_v51  ;;  %v1760_v58 = vld [vmem:[#allocation7 + $0x70] sm:$0xff]   ;;  %v1762_v60 = vld [vmem:[#allocation7 + $0x78] sm:$0xff]   ;;  %v1764_v62 = vld [vmem:[#allocation8 + $0x40] sm:$0xff]   ;;  %s1308_s24 = sshll.u32 %s408_s19, 4  ;;  %s1295_s30 = scalar_lea.sflag [#allocation4], %s2282_s20  ;;  %s2361_s24 = int_to_ptr.vmem [resolvable:$true] %s1308_s24 }
  0xb0   : > { %656 = vmatpush1.bf16.msra.mxu0 %v1713_v9  ;;  %v441_v39 = vsel %vm429_vm3, %v436_v37, %v440_v35  ;;  %1546 = vmatprep.subr.bf16.mxu1 %v1754_v52  ;;  %v1761_v59 = vld [vmem:[#allocation7 + $0x30] sm:$0xff]   ;;  %v1763_v61 = vld [vmem:[#allocation7 + $0x38] sm:$0xff]   ;;  %v1765_v25 = vld [vmem:[#allocation8] sm:$0xff]   ;;  %s1938_s21 = scalar_lea.vmem %s2361_s24, 128  ;;  %s2023_s13 = smov [#allocation11]  }
  0xb1   : > { %657 = vmatprep.subr.bf16.mxu0 %v1714_v10  ;;  %679 = vmatprep.mubr.bf16.mxu0 %v441_v39  ;;  %v2317_v2 = vld [vmem:[%s2407_s2] sm:$0x3]  ;;  %v1766_v27 = vld [vmem:[#allocation8 + $0x48] sm:$0xff]   ;;  %v1771_v31 = vld [vmem:[#allocation8 + $0x18] sm:$0xff]   ;;  %p1939_p8 = scmp.ne.s32.totalorder %s2361_s24, %s1938_s21  ;;  %s1942_s9 = sshll.u32 %s2023_s13, 4  ;;  %s1943_s9 = int_to_ptr.vmem [resolvable:$false] %s1942_s9 }
  0xb2   : > { %v480_v3 = vrot.slane %v2317_v2, %v479_v1  ;;  %v1769_v12 = vld [vmem:[#allocation8 + $0x10] sm:$0xff]   ;;  %v1772_v32 = vld [vmem:[#allocation8 + $0x60] sm:$0xff]   ;;  %v1774_v34 = vld [vmem:[#allocation8 + $0x68] sm:$0xff]   ;;  %s1944_s29 = scalar_lea.vmem %s1943_s9, 256  ;;  %p1945_p3 = scmp.lt.s32.totalorder %s2361_s24, %s1943_s9 }
  0xb3   : > { %1547 = vmatpush3.bf16.msra.mxu1 %v1755_v53  ;;  %v1775_v35 = vld [vmem:[#allocation8 + $0x28] sm:$0xff]   ;;  %v1777_v37 = vld [vmem:[#allocation8 + $0x30] sm:$0xff]   ;;  %v1779_v39 = vld [vmem:[#allocation8 + $0x38] sm:$0xff]   ;;  %p1940_p10 = pnand %p1939_p8, %p2227_p6  ;;  %p1946_p7 = scmp.lt.s32.totalorder %s1944_s29, %s1938_s21 }
  0xb4   : > { %658 = vmatpush1.bf16.msra.mxu0 %v1716_v11  ;;  %1548 = vmatprep.subr.bf16.mxu1 %v1756_v54  ;;  %s2359_s17 = scalar_lea.hbm %s2444_s15, %s1534_s14 }
  0xb5   : > { %659 = vmatprep.subr.bf16.mxu0 %v1717_v13  ;;  %p1941_p12 = pneg %p1940_p10  ;;  %p1947_p9 = por %p1946_p7, %p1945_p3 }
  0xb7   : > { %1549 = vmatpush3.bf16.msra.mxu1 %v1757_v55  ;;  %p1948_p13 = pnand %p1947_p9, %p1941_p12 }
  0xb8   : > { %660 = vmatpush1.bf16.msra.mxu0 %v1719_v14  ;;  %1550 = vmatprep.subr.bf16.mxu1 %v1758_v56 }
  0xb9   : > { %661 = vmatprep.subr.bf16.mxu0 %v1720_v15 }
  0xbb   : > { %1551 = vmatpush3.bf16.msra.mxu1 %v1759_v57 }
  0xbc   : > { %662 = vmatpush1.bf16.msra.mxu0 %v1722_v22  ;;  %1552 = vmatprep.subr.bf16.mxu1 %v1760_v58 }
  0xbd   : > { %663 = vmatprep.subr.bf16.mxu0 %v1723_v23 }
  0xbf   : > { %1553 = vmatpush3.bf16.msra.mxu1 %v1761_v59 }
  0xc0   : > { %664 = vmatpush1.bf16.msra.mxu0 %v1725_v28  ;;  %1554 = vmatprep.subr.bf16.mxu1 %v1762_v60  ;;  %v1767_v28 = vld [vmem:[#allocation8 + $0x8] sm:$0xff]  }
  0xc1   : > { %665 = vmatprep.subr.bf16.mxu0 %v1726_v29  ;;  %v1768_v29 = vld [vmem:[#allocation8 + $0x50] sm:$0xff]  }
  0xc3   : > { %1555 = vmatpush3.bf16.msra.mxu1 %v1763_v61 }
  0xc4   : > { %666 = vmatpush1.bf16.msra.mxu0 %v1728_v33  ;;  %1562 = vmatprep.subr.bf16.mxu1 %v1764_v62  ;;  %v1773_v33 = vld [vmem:[#allocation8 + $0x20] sm:$0xff]  }
  0xc5   : > { %667 = vmatprep.subr.bf16.mxu0 %v1729_v36  ;;  %v1776_v36 = vld [vmem:[#allocation8 + $0x70] sm:$0xff]  }
  0xc8   : > { %668 = vmatpush1.bf16.msra.mxu0 %v1731_v38  ;;  %v1778_v38 = vld [vmem:[#allocation8 + $0x78] sm:$0xff]  }
  0xc9   : > { %669 = vmatprep.subr.bf16.mxu0 %v1732_v40  ;;  %v1780_v40 = vld [vmem:[#allocation10 + $0x40] sm:$0xff]  }
  0xcc   : > { %670 = vmatpush1.bf16.msra.mxu0 %v1734_v41  ;;  %v1781_v41 = vld [vmem:[#allocation10] sm:$0xff]  }
  0xcd   : > { %671 = vmatprep.subr.bf16.mxu0 %v1735_v42  ;;  %v1782_v42 = vld [vmem:[#allocation10 + $0x48] sm:$0xff]  }
  0xd0   : > { %672 = vmatpush1.bf16.msra.mxu0 %v1737_v43  ;;  %v1783_v43 = vld [vmem:[#allocation10 + $0x8] sm:$0xff]  }
  0xd1   : > { %673 = vmatprep.subr.bf16.mxu0 %v1738_v44  ;;  %v1784_v44 = vld [vmem:[#allocation10 + $0x50] sm:$0xff]  }
  0xd4   : > { %674 = vmatpush1.bf16.msra.mxu0 %v1740_v45  ;;  %v1785_v45 = vld [vmem:[#allocation10 + $0x10] sm:$0xff]  }
  0xd5   : > { %675 = vmatprep.subr.bf16.mxu0 %v1741_v46  ;;  %v1786_v46 = vld [vmem:[#allocation10 + $0x58] sm:$0xff]  }
  0xd8   : > { %676 = vmatpush1.bf16.msra.mxu0 %v1743_v47  ;;  %v483_v47 = vsub.s32 1, %v2311_v0 }
  0xd9   : > { %677 = vmatprep.subr.bf16.mxu0 %v1744_v48 }
  0xda   : > { %v484_v51 = vrot.slane %v2317_v2, %v483_v47 }
  0xdc   : > { %678 = vmatpush1.bf16.msra.mxu0 %v1746_v49  ;;  %v1469_v49 = vld [vmem:[%s2409_s4] ss:$0 sm:$0xff] }
  0xdd   : > { %1584 = vmatprep.subr.bf16.mxu0 %v1780_v40 }
  0xdf   : > { %680 = vmatmul.mubr.bf16.vlgmr.msra.gmra.mrb[0].mxu0 %v428_v30  ;;  %v1770_v30 = vld [vmem:[#allocation8 + $0x58] sm:$0xff]  }
  0xe0   : > { %1585 = vmatpush3.bf16.msra.mxu0 %v1781_v41 }
  0xe1   : > { %1586 = vmatprep.subr.bf16.mxu0 %v1782_v42 }
  0xe4   : > { %1587 = vmatpush3.bf16.msra.mxu0 %v1783_v43 }
  0xe5   : > { %1588 = vmatprep.subr.bf16.mxu0 %v1784_v44 }
  0xe8   : > { %1589 = vmatpush3.bf16.msra.mxu0 %v1785_v45 }
  0xe9   : > { %1590 = vmatprep.subr.bf16.mxu0 %v1786_v46 }
 0x1b2   : > { %v681_v4 = vpop.f32.mrb[0].mxu0 }
 0x1b3   : > { %v682_v5 = vadd.f32 %v681_v4, %v480_v3  ;;  %v2320_v6 = vpop.f32.mrb[1].mxu0 }
 0x1b4   : > { %v685_v7 = vpop.f32.mrb[2].mxu0  ;;  %v684_v57 = vadd.f32 %v2320_v6, %v484_v51 }
 0x1b5   : > { %v686_v8 = vadd.f32 %v685_v7, %v480_v3  ;;  %v2322_v9 = vpop.f32.mrb[3].mxu0  ;;  %v690_v10 = vmax.f32 %v682_v5, 0.0 }
 0x1b6   : > { %v688_v60 = vadd.f32 %v2322_v9, %v484_v51  ;;  %v1787_v9 = vld [vmem:[#allocation10 + $0x18] sm:$0xff]  }
 0x1b7   : > { %v691_v11 = vmax.f32 %v686_v8, 0.0  ;;  %1591 = vmatpush3.bf16.msra.mxu0 %v1787_v9 }
 0x1b9   : > { %v692_v13 = vpack.c.bf16 %v691_v11, %v690_v10  ;;  %v1788_v10 = vld [vmem:[#allocation10 + $0x60] sm:$0xff]  }
 0x1ba   : > { %v1789_v11 = vld [vmem:[#allocation10 + $0x20] sm:$0xff]   ;;  %1592 = vmatprep.subr.bf16.mxu0 %v1788_v10 }
 0x1bb   : > { %v694_v14 = vshrl.u32 %v692_v13, 16  ;;  %v697_v16 = vshll.u32 %v692_v13, 16  ;;  %1593 = vmatpush3.bf16.msra.mxu0 %v1789_v11  ;;  %v1790_v13 = vld [vmem:[#allocation10 + $0x68] sm:$0xff]  }
 0x1bc   : > { %1594 = vmatprep.subr.bf16.mxu0 %v1790_v13 }
 0x1bd   : > { %v696_v15 = vrot.slane %v694_v14, 7  ;;  %v1791_v14 = vld [vmem:[#allocation10 + $0x28] sm:$0xff]  }
 0x1bf   : > { %v699_v17 = vor.u32 %v697_v16, %v696_v15  ;;  %v710_v20 = vshll.u32 %v696_v15, 16  ;;  %1595 = vmatpush3.bf16.msra.mxu0 %v1791_v14  ;;  %v1792_v15 = vld [vmem:[#allocation10 + $0x70] sm:$0xff]  }
 0x1c0   : > { %v1793_v16 = vld [vmem:[#allocation10 + $0x30] sm:$0xff]   ;;  %1596 = vmatprep.subr.bf16.mxu0 %v1792_v15 }
 0x1c1   : > { %v701_v18 = vsel %vm2303_vm2, 0, %v699_v17  ;;  %v712_v24 = vrot.slane %v710_v20, 1  ;;  %v1794_v17 = vld [vmem:[#allocation10 + $0x78] sm:$0xff]   ;;  %v1486_v20 = vld [vmem:[%s2411_s6] ss:$0 sm:$0xff] }
 0x1c2   : > { %v705_v19 = vshll.u32 %v701_v18, 16  ;;  %v703_v21 = vshrl.u32 %v701_v18, 16 }
 0x1c3   : > { %1597 = vmatpush3.bf16.msra.mxu0 %v1793_v16 }
 0x1c4   : > { %v707_v22 = vrot.slane %v705_v19, 1  ;;  %1598 = vmatprep.subr.bf16.mxu0 %v1794_v17 }
 0x1c6   : > { %v708_v23 = vor.u32 %v707_v22, %v703_v21 }
 0x1c8   : > { %v713_v26 = vsel %vm429_vm3, %v708_v23, %v712_v24 }
 0x1c9   : > { %882 = vmatprep.mubr.bf16.mxu1 %v713_v26 }
 0x1ca   : > { %883 = vmatmul.mubr.bf16.vlgmr.msra.gmra.mrb[0].mxu1 %v701_v18  ;;  %v1795_v18 = vld [vmem:[#allocation10 + $0x38] sm:$0xff]  }
 0x1cb   : > { %1563 = vmatpush3.bf16.msra.mxu1 %v1765_v25  ;;  %1599 = vmatpush3.bf16.msra.mxu0 %v1795_v18 }
 0x1cc   : > { %1564 = vmatprep.subr.bf16.mxu1 %v1766_v27 }
 0x1cf   : > { %1565 = vmatpush3.bf16.msra.mxu1 %v1767_v28 }
 0x1d0   : > { %1566 = vmatprep.subr.bf16.mxu1 %v1768_v29 }
 0x1d3   : > { %1567 = vmatpush3.bf16.msra.mxu1 %v1769_v12 }
 0x1d4   : > { %1568 = vmatprep.subr.bf16.mxu1 %v1770_v30 }
 0x1d7   : > { %1569 = vmatpush3.bf16.msra.mxu1 %v1771_v31 }
 0x1d8   : > { %1570 = vmatprep.subr.bf16.mxu1 %v1772_v32 }
 0x1db   : > { %1571 = vmatpush3.bf16.msra.mxu1 %v1773_v33 }
 0x1dc   : > { %1572 = vmatprep.subr.bf16.mxu1 %v1774_v34 }
 0x1df   : > { %1573 = vmatpush3.bf16.msra.mxu1 %v1775_v35 }
 0x1e0   : > { %1574 = vmatprep.subr.bf16.mxu1 %v1776_v36  ;;  %v1505_v36 = vld [vmem:[%s2443_s23] ss:$0 sm:$0xff] }
 0x1e3   : > { %1575 = vmatpush3.bf16.msra.mxu1 %v1777_v37 }
 0x1e4   : > { %1576 = vmatprep.subr.bf16.mxu1 %v1778_v38 }
 0x1e7   : > { %1577 = vmatpush3.bf16.msra.mxu1 %v1779_v39 }
 0x29d   : > { %v1556_v48 = vpop.f32.mrb[0].mxu1 }
 0x29e   : > { %v1557_v50 = vpop.f32.mrb[1].mxu1 }
 0x29f   : > { %v1558_v52 = vadd.f32 %v1557_v50, %v1556_v48  ;;  %v1559_v53 = vpop.f32.mrb[2].mxu1 }
 0x2a0   : > { %v1560_v54 = vpop.f32.mrb[3].mxu1 }
 0x2a1   : > { %v885_v55 = vadd.f32 %v1558_v52, %v1469_v49  ;;  %v1561_v56 = vadd.f32 %v1560_v54, %v1559_v53 }
 0x2a3   : > { %v891_v58 = vmax.f32 %v885_v55, 0.0  ;;  %v888_v59 = vadd.f32 %v1561_v56, %v1469_v49 }
 0x2a5   : > { %v893_v61 = vadd.f32 %v891_v58, %v684_v57  ;;  %v892_v62 = vmax.f32 %v888_v59, 0.0 }
 0x2a7   : > { %v894_v63 = vadd.f32 %v892_v62, %v688_v60  ;;  %v895_v0 = vmax.f32 %v893_v61, 0.0 }
 0x2a9   : > { %v896_v1 = vmax.f32 %v894_v63, 0.0 }
 0x2ab   : > { %v897_v3 = vpack.c.bf16 %v896_v1, %v895_v0 }
 0x2ad   : > { %v899_v4 = vrot.slane %v897_v3, 7  ;;  %v1089_v43 = vunpack.c.l.bf16 %v897_v3  ;;  %v1090_v47 = vunpack.c.h.bf16 %v897_v3 }
 0x2af   : > { %v903_v2 = vsel %vm425_vm0, 0, %v899_v4  ;;  %v908_v5 = vrot.slane %v899_v4, 1 }
 0x2b0   : > { %v907_v7 = vrot.slane %v903_v2, 1 }
 0x2b2   : > { %v909_v6 = vsel %vm906_vm4, %v907_v7, %v908_v5 }
 0x2b3   : > { %1078 = vmatprep.mubr.bf16.mxu1 %v909_v6 }
 0x2b4   : > { %1504 = vmatmul.mubr.msk.bf16.vlgmr.msra.gmra.mrb[4].mxu1 %vm2336_vm5, %v899_v4 }
 0x387   : > { %v1578_v19 = vpop.f32.mrb[4].mxu1 }
 0x388   : > { %v1579_v21 = vpop.f32.mrb[5].mxu1 }
 0x389   : > { %v1580_v22 = vadd.f32 %v1579_v21, %v1578_v19  ;;  %v1581_v23 = vpop.f32.mrb[6].mxu1 }
 0x38a   : > { %v1582_v24 = vpop.f32.mrb[7].mxu1 }
 0x38b   : > { %v1081_v25 = vadd.f32 %v1580_v22, %v1486_v20  ;;  %v1583_v26 = vadd.f32 %v1582_v24, %v1581_v23 }
 0x38d   : > { %v1084_v27 = vadd.f32 %v1583_v26, %v1486_v20  ;;  %v1087_v28 = vmax.f32 %v1081_v25, 0.0 }
 0x38f   : > { %v1088_v29 = vmax.f32 %v1084_v27, 0.0 }
 0x391   : > { %v1091_v12 = vpack.c.bf16 %v1088_v29, %v1087_v28 }
 0x393   : > { %v1093_v30 = vrot.slane %v1091_v12, 7 }
 0x395   : > { %v1095_v31 = vsel %vm425_vm0, 0, %v1093_v30  ;;  %v1099_v32 = vrot.slane %v1093_v30, 1 }
 0x396   : > { %v1098_v33 = vrot.slane %v1095_v31, 1 }
 0x398   : > { %v1100_v34 = vsel %vm906_vm4, %v1098_v33, %v1099_v32 }
 0x399   : > { %1269 = vmatprep.mubr.bf16.mxu0 %v1100_v34 }
 0x39a   : > { %1523 = vmatmul.mubr.msk.bf16.vlgmr.msra.gmra.mrb[4].mxu0 %vm2336_vm5, %v1093_v30 }
 0x46d   : > { %v1600_v35 = vpop.f32.mrb[4].mxu0 }
 0x46e   : > { %v1601_v37 = vpop.f32.mrb[5].mxu0 }
 0x46f   : > { %v1602_v38 = vadd.f32 %v1601_v37, %v1600_v35  ;;  %v1603_v39 = vpop.f32.mrb[6].mxu0 }
 0x470   : > { %v1604_v40 = vpop.f32.mrb[7].mxu0 }
 0x471   : > { %v1272_v41 = vadd.f32 %v1602_v38, %v1505_v36  ;;  %v1605_v42 = vadd.f32 %v1604_v40, %v1603_v39 }
 0x473   : > { %v1278_v44 = vmax.f32 %v1272_v41, 0.0  ;;  %v1275_v45 = vadd.f32 %v1605_v42, %v1505_v36 }
 0x475   : > { %v1280_v46 = vadd.f32 %v1278_v44, %v1089_v43  ;;  %v1279_v48 = vmax.f32 %v1275_v45, 0.0 }
 0x477   : > { %v1281_v49 = vadd.f32 %v1279_v48, %v1090_v47  ;;  %v1282_v50 = vmax.f32 %v1280_v46, 0.0 }
 0x479   : > { %v1283_v51 = vmax.f32 %v1281_v49, 0.0 }
 0x47b   : > { %v1538_v52 = vpack.c.bf16 %v1283_v51, %v1282_v50 }
 0x47d   : > { %1539 = vst [vmem:[%s408_s19] sm:$0xff] %v1538_v52  }
 0x47e   : > { %1951 = shalt.err (!%p1948_p13)
}
 0x47f   : > { %s1952_s27 = scalar_lea.hbm %s2359_s17, 128  ;;  %s1956_s23 = scalar_lea.hbm %s2444_s15, 256 }
 0x480   : > { %p1953_p0 = scmp.ne.s32.totalorder %s2359_s17, %s1952_s27  ;;  %p1957_p1 = scmp.lt.u32.totalorder %s2359_s17, %s2444_s15 }
 0x481   : > { %p1958_p2 = scmp.lt.u32.totalorder %s1956_s23, %s1952_s27  ;;  %p1960_p8 = scmp.lt.u32.totalorder %s1952_s27, %s2359_s17 }
 0x482   : > { %p1954_p5 = pnand %p1953_p0, %p2227_p6 }
 0x483   : > { %p1959_p4 = por %p1958_p2, %p1957_p1 }
 0x484   : > { %p1955_p11 = pneg %p1954_p5 }
 0x485   : > { %p1961_p10 = por %p1960_p8, %p1959_p4 }
 0x487   : > { %p1962_p12 = pnand %p1961_p10, %p1955_p11 }
 0x489   : > { %1965 = shalt.err (!%p1962_p12)
}
 0x48a   : > { %s2024_s25 = smov 64   ;;  %s2025_s18 = smov 4  }
 0x48b   : > { %1624 = dma.vmem_to_hbm [thread:$0]  (%p2227_p6), %s2361_s24, 128, %s2359_s17, %s1295_s30, %s2024_s25, %s2024_s25, %s2025_s18  }
 0x48c PF: > { %s2445_s21 = sld [smem:[#allocation16_spill]]  ;;  %s2446_s13 = sld [smem:[#allocation17_spill]] }
 0x48d   : > { %p2448_p7 = scmp.ge.s32.totalorder %s2012_s12, 2 }
 0x492   : > { %s1323_s9 = sand.u32 1, %s2445_s21   ;;  %p2447_p3 = scmp.ne.s32.totalorder %s2446_s13, 0 }
 0x493   : > { %s1324_s29 = scalar_lea.sflag [#allocation4], %s1323_s9 }
 0x494   : > { %p1644_p9 = pnand %p2448_p7, %p2447_p3 }
 0x496   : > { %1995 = dma.done.wait (!%p1644_p9), %s1324_s29, 128  }
 0x497   : > { %1997 = vsyncadd (!%p1644_p9), %s1324_s29, 4294967168  ;;  %p24_p13 = scmp.ge.s32.totalorder %s2217_s28, 4   ;;  %s2449_s30 = smov %s2004_s10 }
 0x498   : > { %s2450_s10 = smov %s2008_s11  ;;  %s2451_s11 = smov %s2233_s16 }
 0x499   : > { %s2452_s12 = smov %s2217_s28  ;;  %26 = sbr.rel (!%p24_p13) target bundleno = 10 (0xa), region = 117 }
 0x4a0   :  { %1329 = vsyncpa [#allocation3], 1 }
 0x4a1   :  { %1331 = vsyncpa [#allocation3 + $0x1], 1 }
 0x4a2   :  { %1332 = vsyncpa [#allocation6], 1 }
 0x4a3   :  { %1333 = vsyncpa [#allocation9], 1 }
 0x4a4   :  { %1334 = vsyncpa [#allocation4], 1 }
 0x4a5   :  { %1336 = vsyncpa [#allocation4 + $0x1], 1 }

</bundles_post_ra>
